<compile_context>
chip_gen: v5e
topology: v5e:2x2
jax: 0.10.0
libtpu: 0.0.40
codegen_flags: <defaults>
</compile_context>

<pallas_src>
import functools

import jax
import jax.numpy as jnp
from jax.experimental import pallas as pl
from jax.experimental.pallas import tpu as pltpu


_MIN_TILE_ROWS = 16            # bf16-friendly sublane packing (multiple of 8)
_MAX_TILE_ROWS = 32 * 1024
_BLOCK_H = 32 * 1024           # hidden-block width for the (rare) very-wide-H path


def _round_up(x, m):
    return ((x + m - 1) // m) * m


def _vmem_limits():
    """Generation-aware VMEM budgets.

    Returns (vmem_limit_bytes, per_input_tile_budget_bytes).  v5e/v6e have
    128 MiB physical VMEM per core, v7x only 64 MiB.  The per-tile budget
    leaves room for the double-buffered input plus the int32 candidate/mask
    temps of the argmax chain (up to ~2x the tile for bf16 inputs).
    """
    try:
        phys = int(pltpu.get_tpu_info().vmem_capacity_bytes)
    except Exception:
        phys = 64 * 1024 * 1024            # conservative fallback (v7x per-TC)
    vmem_limit = min(int(phys * 0.7), 100 * 1024 * 1024)
    row_budget = min(vmem_limit // 8, 12 * 1024 * 1024)
    return vmem_limit, row_budget


def _choose_tile_rows(n_rows, row_bytes, row_budget):
    t = row_budget // max(row_bytes, 1)
    t = (t // _MIN_TILE_ROWS) * _MIN_TILE_ROWS
    t = max(_MIN_TILE_ROWS, min(_MAX_TILE_ROWS, t))
    t = min(t, _round_up(n_rows, _MIN_TILE_ROWS))
    # Megacore (v7x has 2 TensorCores, grid row axis is 'parallel'): prefer at
    # least two, and when small an even number of, row tiles.  Only shrinks t,
    # so the VMEM budget above still holds.
    num_tiles = pl.cdiv(n_rows, t)
    if num_tiles == 1 and n_rows > _MIN_TILE_ROWS:
        t = max(_MIN_TILE_ROWS, _round_up(pl.cdiv(n_rows, 2), _MIN_TILE_ROWS))
    elif 1 < num_tiles < 8 and num_tiles % 2 == 1:
        t = max(_MIN_TILE_ROWS,
                _round_up(pl.cdiv(n_rows, num_tiles + 1), _MIN_TILE_ROWS))
    return t


def _reduce_max_kernel(x_ref, val_ref, idx_ref):
    """Max + argmax over the last axis; the whole hidden dim fits one block."""
    x = x_ref[...]
    h = x.shape[-1]
    m = jnp.max(x, axis=-1, keepdims=True)
    # (1, H) column indices broadcast across rows (no full-tile iota temp).
    col = jax.lax.broadcasted_iota(jnp.int32, (1, h), 1)
    hit = x == m
    if jnp.issubdtype(x.dtype, jnp.floating):
        # torch.max propagates NaN and returns the first NaN's index; jnp.max
        # propagates NaN for the value, the isnan term fixes the index.
        hit = hit | jnp.isnan(x)
    cand = jnp.where(hit, col, h)                       # first occurrence wins
    val_ref[...] = m.astype(val_ref.dtype)
    idx_ref[...] = jnp.min(cand, axis=-1, keepdims=True)


def _reduce_max_blocked_kernel(x_ref, val_ref, idx_ref, m_sc, a_sc, *, h_total):
    """Online max/argmax when the hidden dim is blocked over an 'arbitrary' axis."""
    j = pl.program_id(1)
    n_h = pl.num_programs(1)
    hb = x_ref.shape[-1]
    is_float = jnp.issubdtype(x_ref.dtype, jnp.floating)
    lowest = -jnp.inf if is_float else int(jnp.iinfo(x_ref.dtype).min)

    @pl.when(j == 0)
    def _():
        m_sc[...] = jnp.full(m_sc.shape, lowest, m_sc.dtype)
        a_sc[...] = jnp.zeros(a_sc.shape, a_sc.dtype)

    x = x_ref[...]                                      # native dtype, no upcast
    col = jax.lax.broadcasted_iota(jnp.int32, (1, hb), 1) + j * hb

    def accumulate(xv):
        blk_m = jnp.max(xv, axis=-1, keepdims=True)
        hit = xv == blk_m
        if is_float:
            hit = hit | jnp.isnan(xv)
        cand = jnp.where(hit, col, jnp.iinfo(jnp.int32).max)
        blk_a = jnp.min(cand, axis=-1, keepdims=True)
        better = blk_m > m_sc[...]          # strict > keeps the first occurrence
        if is_float:
            better = better | (jnp.isnan(blk_m) & ~jnp.isnan(m_sc[...]))
        m_sc[...] = jnp.where(better, blk_m, m_sc[...])
        a_sc[...] = jnp.where(better, blk_a, a_sc[...])

    if h_total % hb:
        # Only the last H block contains padding columns; interior blocks skip
        # the compare+select mask entirely.
        @pl.when(j < n_h - 1)
        def _():
            accumulate(x)

        @pl.when(j == n_h - 1)
        def _():
            accumulate(jnp.where(col < h_total, x, lowest))
    else:
        accumulate(x)

    @pl.when(j == n_h - 1)
    def _():
        val_ref[...] = m_sc[...].astype(val_ref.dtype)
        idx_ref[...] = a_sc[...]


def pallas_reduce_max(x):
    """Equivalent of torch.max(x, dim=-1): returns (values, indices[int32])."""
    orig_shape = x.shape
    h = orig_shape[-1]
    x2 = x.reshape(-1, h)
    n_rows = x2.shape[0]
    itemsize = jnp.dtype(x2.dtype).itemsize

    vmem_limit, row_budget = _vmem_limits()

    out_shapes = (
        jax.ShapeDtypeStruct((n_rows, 1), x.dtype),
        jax.ShapeDtypeStruct((n_rows, 1), jnp.int32),
    )
    cost = pl.CostEstimate(
        flops=3 * n_rows * h,
        transcendentals=0,
        bytes_accessed=n_rows * h * itemsize + n_rows * (itemsize + 4),
    )

    fits_single_block = h * itemsize <= row_budget // _MIN_TILE_ROWS

    if fits_single_block:
        tile_rows = _choose_tile_rows(n_rows, h * itemsize, row_budget)
        grid = (pl.cdiv(n_rows, tile_rows),)   # ragged last tile handled by Pallas
        vals, idx = pl.pallas_call(
            _reduce_max_kernel,
            out_shape=out_shapes,
            grid_spec=pltpu.PrefetchScalarGridSpec(
                num_scalar_prefetch=0,
                grid=grid,
                in_specs=[pl.BlockSpec((tile_rows, h), lambda i: (i, 0))],
                out_specs=(
                    pl.BlockSpec((tile_rows, 1), lambda i: (i, 0)),
                    pl.BlockSpec((tile_rows, 1), lambda i: (i, 0)),
                ),
            ),
            compiler_params=pltpu.CompilerParams(
                dimension_semantics=("parallel",),
                vmem_limit_bytes=vmem_limit),
            cost_estimate=cost,
        )(x2)
    else:
        # Extremely wide hidden dims: block H on an 'arbitrary' grid axis and
        # keep a running max / argmax in VMEM scratch (accumulator pattern).
        block_h = min(_BLOCK_H, _round_up(h, 128))
        tile_rows = _choose_tile_rows(n_rows, block_h * itemsize, row_budget)
        grid = (pl.cdiv(n_rows, tile_rows), pl.cdiv(h, block_h))
        kernel = functools.partial(_reduce_max_blocked_kernel, h_total=h)
        vals, idx = pl.pallas_call(
            kernel,
            out_shape=out_shapes,
            grid_spec=pltpu.PrefetchScalarGridSpec(
                num_scalar_prefetch=0,
                grid=grid,
                in_specs=[pl.BlockSpec((tile_rows, block_h), lambda i, j: (i, j))],
                out_specs=(
                    pl.BlockSpec((tile_rows, 1), lambda i, j: (i, 0)),
                    pl.BlockSpec((tile_rows, 1), lambda i, j: (i, 0)),
                ),
                scratch_shapes=[
                    pltpu.VMEM((tile_rows, 1), x2.dtype),   # running max, input dtype
                    pltpu.VMEM((tile_rows, 1), jnp.int32),  # running argmax
                ],
            ),
            compiler_params=pltpu.CompilerParams(
                dimension_semantics=("parallel", "arbitrary"),
                vmem_limit_bytes=vmem_limit),
            cost_estimate=cost,
        )(x2)

    lead = orig_shape[:-1]
    return vals.reshape(lead), idx.reshape(lead)


if __name__ == "__main__":
    key = jax.random.PRNGKey(0)
    # Small shape consistent with the module's forward: (batch, seq, hidden),
    # hidden kept lane-dense (multiple of 128).
    x = jax.random.normal(key, (2, 8, 128), dtype=jnp.float32)

    vals, idx = pallas_reduce_max(x)
    jax.block_until_ready((vals, idx))

    ref_vals = jnp.max(x, axis=-1)
    ref_idx = jnp.argmax(x, axis=-1).astype(jnp.int32)
    assert vals.shape == ref_vals.shape and idx.shape == ref_idx.shape
    assert jnp.array_equal(vals, ref_vals), "max values mismatch"
    assert jnp.array_equal(idx, ref_idx), "argmax indices mismatch"

    # bf16 input, ragged rows, non-multiple-of-128 hidden dim.
    x2 = jax.random.normal(jax.random.PRNGKey(1), (3, 5, 200), dtype=jnp.bfloat16)
    v2, i2 = pallas_reduce_max(x2)
    jax.block_until_ready((v2, i2))
    assert jnp.array_equal(v2, jnp.max(x2, axis=-1)), "bf16 max values mismatch"
    assert jnp.array_equal(i2, jnp.argmax(x2, axis=-1).astype(jnp.int32)), \
        "bf16 argmax indices mismatch"

    # Integer input stays in its native dtype end-to-end.
    x3 = jax.random.randint(jax.random.PRNGKey(2), (5, 160), -1000, 1000,
                            dtype=jnp.int32)
    v3, i3 = pallas_reduce_max(x3)
    jax.block_until_ready((v3, i3))
    assert jnp.array_equal(v3, jnp.max(x3, axis=-1)), "int32 max values mismatch"
    assert jnp.array_equal(i3, jnp.argmax(x3, axis=-1).astype(jnp.int32)), \
        "int32 argmax indices mismatch"

    print("KERNEL_OK")
</pallas_src>

<mosaic_0001>
module attributes {stable_mosaic.version = 11 : i64} {
  func.func @_reduce_max_kernel(%arg0: i32, %arg1: memref<16x128xf32, #tpu.memory_space<vmem>>, %arg2: memref<16x1xf32, #tpu.memory_space<vmem>>, %arg3: memref<16x1xi32, #tpu.memory_space<vmem>>) attributes {dimension_semantics = [#tpu.dimension_semantics<parallel>], iteration_bounds = array<i64: 1>, scalar_prefetch = 0 : i64, scratch_operands = 0 : i64, tpu.core_type = #tpu.core_type<tc>, window_params = [{transform_indices = @transform_0, window_bounds = array<i64: 16, 128>}, {transform_indices = @transform_1, window_bounds = array<i64: 16, 1>}, {transform_indices = @transform_2, window_bounds = array<i64: 16, 1>}]} {
    %c0 = arith.constant 0 : index
    %c0_0 = arith.constant 0 : index
    %0 = vector.load %arg1[%c0, %c0_0] : memref<16x128xf32, #tpu.memory_space<vmem>>, vector<16x128xf32>
    %cst = arith.constant dense<0xFF800000> : vector<16xf32>
    %1 = vector.multi_reduction <maximumf>, %0, %cst [1] : vector<16x128xf32> to vector<16xf32>
    %2 = vector.shape_cast %1 : vector<16xf32> to vector<16x1xf32>
    %3 = tpu.iota {dimensions = array<i32: 1>} : vector<1x128xi32>
    %4 = vector.broadcast %2 : vector<16x1xf32> to vector<16x128xf32>
    %5 = arith.cmpf oeq, %0, %4 : vector<16x128xf32>
    %6 = arith.cmpf one, %0, %0 : vector<16x128xf32>
    %7 = arith.ori %5, %6 : vector<16x128xi1>
    %c128_i32 = arith.constant 128 : i32
    %8 = vector.shape_cast %3 : vector<1x128xi32> to vector<1x128xi32>
    %9 = vector.broadcast %8 : vector<1x128xi32> to vector<16x128xi32>
    %10 = vector.broadcast %c128_i32 : i32 to vector<16x128xi32>
    %11 = arith.select %7, %9, %10 : vector<16x128xi1>, vector<16x128xi32>
    %c0_1 = arith.constant 0 : index
    %c0_2 = arith.constant 0 : index
    %12 = vector.load %arg2[%c0_1, %c0_2] : memref<16x1xf32, #tpu.memory_space<vmem>>, vector<16x1xf32>
    tpu.vector_store %arg2[%c0_1, %c0_2], %2 {strides = array<i32>} : memref<16x1xf32, #tpu.memory_space<vmem>>, vector<16x1xf32>,
    %cst_3 = arith.constant dense<2147483647> : vector<16xi32>
    %13 = vector.multi_reduction <minsi>, %11, %cst_3 [1] : vector<16x128xi32> to vector<16xi32>
    %14 = vector.shape_cast %13 : vector<16xi32> to vector<16x1xi32>
    %c0_4 = arith.constant 0 : index
    %c0_5 = arith.constant 0 : index
    %15 = vector.load %arg3[%c0_4, %c0_5] : memref<16x1xi32, #tpu.memory_space<vmem>>, vector<16x1xi32>
    tpu.vector_store %arg3[%c0_4, %c0_5], %14 {strides = array<i32>} : memref<16x1xi32, #tpu.memory_space<vmem>>, vector<16x1xi32>,
    return
  }
  func.func @transform_0(%arg0: i32) -> (i32, i32) {
    %c0_i32 = arith.constant 0 : i32
    %c0_i32_0 = arith.constant 0 : i32
    return %arg0, %c0_i32 : i32, i32
  }
  func.func @transform_1(%arg0: i32) -> (i32, i32) {
    %c0_i32 = arith.constant 0 : i32
    %c0_i32_0 = arith.constant 0 : i32
    return %arg0, %c0_i32 : i32, i32
  }
  func.func @transform_2(%arg0: i32) -> (i32, i32) {
    %c0_i32 = arith.constant 0 : i32
    %c0_i32_0 = arith.constant 0 : i32
    return %arg0, %c0_i32 : i32, i32
  }
}

</mosaic_0001>

<bundles_post_ra>
// kernel: tpu_custom_call.1
= control target key start
LH: loop header
LB: loop body
LE: loop exit
PB: predicated region body
PF: predicated region fallthrough
CT: control target
= control target key end

     0   :  { %8 = vsyncpa [#allocation3], 0  ;;  %s113_s12 = smov [#allocation2]   ;;  %s114_s14 = smov 128   ;;  %s150_s0 = inlined_call_operand.hbm [shape: f32[16,128], index: 0, kind: input, shape index: {}]   ;;  %s151_s1 = inlined_call_operand.vmem [shape: f32[16,1], index: 1, kind: output, shape index: {0}]   ;;  %s152_s2 = inlined_call_operand.vmem [shape: s32[16,1], index: 2, kind: output, shape index: {1}]  }
   0x1   :  { %s13_s11 = sshll.u32 %s150_s0, 4  ;;  %s15_s13 = sshll.u32 %s113_s12, 4  ;;  %s14_s11 = int_to_ptr.hbm [resolvable:$true] %s13_s11  ;;  %s16_s13 = int_to_ptr.vmem [resolvable:$true] %s15_s13 }
   0x2   :  { %s115_s15 = smov 8  }
   0x3   :  { %21 = dma.hbm_to_vmem [thread:$0]  %s14_s11, 256, %s16_s13, [#allocation3], %s114_s14, %s114_s14, %s115_s15  }
   0x4   :  { %111 = dma.done.wait [#allocation3], 256  }
   0x5   :  { %112 = vsyncadd [#allocation3], 4294967040  ;;  %v26_v0 = vld [vmem:[#allocation2] sm:$0xff]  ;;  %v27_v1 = vld [vmem:[#allocation2 + $0x8] sm:$0xff]  ;;  %v32_v2 = vlaneseq  ;;  %vm42_vm0 = vcmask 7168  }
   0x6   :  { %28 = vmax.xlane.f32.xlu0 %v26_v0  ;;  %vm36_vm1 = vcmp.ne.f32.partialorder %v26_v0, %v26_v0  ;;  %vm37_vm4 = vcmp.ne.f32.partialorder %v27_v1, %v27_v1 }
   0x7   :  { %v33_v3 = vand.u32 127, %v32_v2 }
   0xe   :  { %30 = vmax.xlane.f32.xlu0 %v27_v1 }
  0x79   :  { %v29_v4 = vpop.xlane.xlu0 %28 }
  0x7a   :  { %vm34_vm2 = vcmp.eq.f32.partialorder %v26_v0, %v29_v4  ;;  %43 = vst.msk [vmem:[%s151_s1] sm:$0xff] %vm42_vm0, %v29_v4 }
  0x7b   :  { %vm38_vm3 = vmor %vm34_vm2, %vm36_vm1 }
  0x7c   :  { %v40_v5 = vsel %vm38_vm3, %v33_v3, 128 }
  0x7d   :  { %v46_v6 = vshra.s32 %v40_v5, 16  ;;  %v45_v12 = vand.u32 65535, %v40_v5 }
  0x7f   :  { %v48_v7 = vcvt.s32.f32 %v46_v6  ;;  %v47_v14 = vcvt.s32.f32 %v45_v12 }
  0x81   :  { %v31_v8 = vpop.xlane.xlu0 %30  ;;  %49 = vmin.xlane.f32.xlu1 %v48_v7 }
  0x82   :  { %vm35_vm5 = vcmp.eq.f32.partialorder %v27_v1, %v31_v8  ;;  %44 = vst.msk [vmem:[%s151_s1 + $0x8] sm:$0xff] %vm42_vm0, %v31_v8 }
  0x83   :  { %vm39_vm6 = vmor %vm35_vm5, %vm37_vm4 }
  0x84   :  { %v41_v9 = vsel %vm39_vm6, %v33_v3, 128 }
  0x85   :  { %v60_v10 = vshra.s32 %v41_v9, 16  ;;  %v59_v16 = vand.u32 65535, %v41_v9 }
  0x87   :  { %v62_v11 = vcvt.s32.f32 %v60_v10  ;;  %v61_v18 = vcvt.s32.f32 %v59_v16 }
  0x89   :  { %63 = vmin.xlane.f32.xlu1 %v62_v11 }
  0xf4   :  { %v50_v13 = vpop.xlane.xlu1 %49 }
  0xf5   :  { %vm51_vm7 = vcmp.eq.f32.partialorder %v48_v7, %v50_v13  ;;  %v56_v20 = vcvt.f32.s32 %v50_v13 }
  0xf6   :  { %v52_v15 = vsel %vm51_vm7, %v47_v14, inf }
  0xf7   :  { %53 = vmin.xlane.f32.xlu2 %v52_v15  ;;  %v57_v22 = vshll.u32 %v56_v20, 16 }
  0xfc   :  { %v64_v17 = vpop.xlane.xlu1 %63 }
  0xfd   :  { %vm65_vm8 = vcmp.eq.f32.partialorder %v62_v11, %v64_v17  ;;  %v70_v25 = vcvt.f32.s32 %v64_v17 }
  0xfe   :  { %v66_v19 = vsel %vm65_vm8, %v61_v18, inf }
  0xff   :  { %67 = vmin.xlane.f32.xlu2 %v66_v19  ;;  %v71_v27 = vshll.u32 %v70_v25, 16 }
 0x16a   :  { %v54_v21 = vpop.xlane.xlu2 %53 }
 0x16b   :  { %v55_v23 = vcvt.f32.s32 %v54_v21 }
 0x16d   :  { %v58_v24 = vadd.s32 %v57_v22, %v55_v23 }
 0x16f   :  { %73 = vst.msk [vmem:[%s152_s2] sm:$0xff] %vm42_vm0, %v58_v24 }
 0x172   :  { %v68_v26 = vpop.xlane.xlu2 %67 }
 0x173   :  { %v69_v28 = vcvt.f32.s32 %v68_v26 }
 0x175   :  { %v72_v29 = vadd.s32 %v71_v27, %v69_v28 }
 0x177   :  { %74 = vst.msk [vmem:[%s152_s2 + $0x8] sm:$0xff] %vm42_vm0, %v72_v29 }
 0x178   :  { %83 = vsyncpa [#allocation3], 1 }

</bundles_post_ra>
